<compile_context>
chip_gen: v5e
topology: v5e:2x2
jax: 0.10.0
libtpu: 0.0.40
codegen_flags: <defaults>
</compile_context>

<pallas_src>
import jax
import jax.numpy as jnp
from jax.experimental import pallas as pl
from jax.experimental.pallas import tpu as pltpu


def _fused_add_dropout_kernel(l_ref, u_ref, out_ref):
    """u = 3*o + p, then dropout(p=0.5, training=True) with scale 2."""
    o = l_ref[...]      # (2, 4)  == randn(2,2,2) flattened  (dropout p=0.0 is identity)
    p = u_ref[0]        # (2, 4)  == rand_like(o)
    d = u_ref[1]        # (2, 4)  uniform draw driving the p=0.5 dropout mask

    u = o + o + o + p                      # r = o+o ; t = o+p ; u = t+r
    # dropout(p=0.5): keep w.p. 0.5, scale survivors by 1/(1-0.5) = 2
    out_ref[...] = jnp.where(d >= 0.5, u + u, jnp.zeros_like(u)).astype(out_ref.dtype)


def _forward_impl(x1, key):
    del x1  # the module never reads its input

    k_n, k_u = jax.random.split(key, 2)

    # l = torch.randn(2, 2, 2)  (flattened to a lane-friendly (2, 4) slab)
    l2 = jax.random.normal(k_n, (2, 4), dtype=jnp.float32)
    # one uniform draw covering both `p = rand_like(o)` and the dropout mask
    uni = jax.random.uniform(k_u, (2, 2, 4), dtype=jnp.float32)

    out2 = pl.pallas_call(
        _fused_add_dropout_kernel,
        out_shape=jax.ShapeDtypeStruct((2, 4), jnp.float32),
        in_specs=[
            pl.BlockSpec(memory_space=pltpu.MemorySpace.VMEM),  # l
            pl.BlockSpec(memory_space=pltpu.MemorySpace.VMEM),  # uniforms
        ],
        out_specs=pl.BlockSpec(memory_space=pltpu.MemorySpace.VMEM),
    )(l2, uni)

    return out2.reshape(2, 2, 2)


model_forward = jax.jit(_forward_impl)


if __name__ == "__main__":
    key = jax.random.PRNGKey(0)
    k_in, k_model = jax.random.split(key)

    # Example input consistent with an NCHW conv-style tensor (unused by model).
    x1 = jax.random.normal(k_in, (2, 4, 16, 16), dtype=jnp.float32)

    out = model_forward(x1, k_model)
    out = jax.block_until_ready(out)

    assert out.shape == (2, 2, 2)
    assert out.dtype == jnp.float32
    assert bool(jnp.all(jnp.isfinite(out)))
    print("KERNEL_OK")
</pallas_src>

<mosaic_0001>
module attributes {stable_mosaic.version = 11 : i64} {
  func.func @_fused_add_dropout_kernel(%arg0: memref<2x4xf32, #tpu.memory_space<vmem>>, %arg1: memref<2x2x4xf32, #tpu.memory_space<vmem>>, %arg2: memref<2x4xf32, #tpu.memory_space<vmem>>) attributes {dimension_semantics = [], scalar_prefetch = 0 : i64, scratch_operands = 0 : i64, tpu.core_type = #tpu.core_type<tc>} {
    %c0 = arith.constant 0 : index
    %c0_0 = arith.constant 0 : index
    %0 = vector.load %arg0[%c0, %c0_0] : memref<2x4xf32, #tpu.memory_space<vmem>>, vector<2x4xf32>
    %c0_1 = arith.constant 0 : index
    %c0_2 = arith.constant 0 : index
    %c0_3 = arith.constant 0 : index
    %1 = vector.load %arg1[%c0_1, %c0_2, %c0_3] : memref<2x2x4xf32, #tpu.memory_space<vmem>>, vector<1x2x4xf32>
    %2 = vector.shape_cast %1 : vector<1x2x4xf32> to vector<2x4xf32>
    %c1 = arith.constant 1 : index
    %c0_4 = arith.constant 0 : index
    %c0_5 = arith.constant 0 : index
    %3 = vector.load %arg1[%c1, %c0_4, %c0_5] : memref<2x2x4xf32, #tpu.memory_space<vmem>>, vector<1x2x4xf32>
    %4 = vector.shape_cast %3 : vector<1x2x4xf32> to vector<2x4xf32>
    %5 = arith.addf %0, %0 : vector<2x4xf32>
    %6 = arith.addf %5, %0 : vector<2x4xf32>
    %7 = arith.addf %6, %2 : vector<2x4xf32>
    %cst = arith.constant 5.000000e-01 : f32
    %8 = vector.broadcast %cst : f32 to vector<2x4xf32>
    %9 = arith.cmpf oge, %4, %8 : vector<2x4xf32>
    %10 = arith.addf %7, %7 : vector<2x4xf32>
    %cst_6 = arith.constant 0.000000e+00 : f32
    %11 = vector.broadcast %cst_6 : f32 to vector<2x4xf32>
    %12 = arith.select %9, %10, %11 : vector<2x4xi1>, vector<2x4xf32>
    %c0_7 = arith.constant 0 : index
    %c0_8 = arith.constant 0 : index
    %13 = vector.load %arg2[%c0_7, %c0_8] : memref<2x4xf32, #tpu.memory_space<vmem>>, vector<2x4xf32>
    tpu.vector_store %arg2[%c0_7, %c0_8], %12 {strides = array<i32>} : memref<2x4xf32, #tpu.memory_space<vmem>>, vector<2x4xf32>,
    return
  }
}

</mosaic_0001>

<bundles_post_ra>
// kernel: _forward_impl.3
= control target key start
LH: loop header
LB: loop body
LE: loop exit
PB: predicated region body
PF: predicated region fallthrough
CT: control target
= control target key end

     0   :  { %vm21_vm1 = vcmask 25600   ;;  %s55_s0 = inlined_call_operand.vmem [shape: f32[2,4], index: 0, kind: input, shape index: {}]   ;;  %s56_s1 = inlined_call_operand.vmem [shape: f32[2,2,4], index: 1, kind: input, shape index: {}]   ;;  %s57_s2 = inlined_call_operand.vmem [shape: f32[2,4], index: 2, kind: output, shape index: {}]  }
   0x1   :  { %v11_v0 = vld [vmem:[%s55_s0] sm:$0x3]  ;;  %v27_v3 = vld [vmem:[%s56_s1 + $0x2] sm:$0x3] }
   0x2   :  { %v15_v1 = vadd.f32 %v11_v0, %v11_v0  ;;  %v12_v2 = vld [vmem:[%s56_s1] sm:$0x3]  ;;  %vm18_vm0 = vcmp.ge.f32.partialorder %v27_v3, 0.5 }
   0x4   :  { %v16_v4 = vadd.f32 %v15_v1, %v11_v0 }
   0x6   :  { %v17_v5 = vadd.f32 %v16_v4, %v12_v2 }
   0x8   :  { %v19_v6 = vadd.f32 %v17_v5, %v17_v5 }
   0xa   :  { %v20_v7 = vsel %vm18_vm0, %v19_v6, 0.0 }
   0xb   :  { %22 = vst.msk [vmem:[%s57_s2] sm:$0x3] %vm21_vm1, %v20_v7 }

</bundles_post_ra>
